<compile_context>
chip_gen: v7x
topology: tpu7x:2x2x1
jax: 0.10.0
libtpu: 0.0.40
codegen_flags: <defaults>
</compile_context>

<pallas_src>
import jax
import jax.numpy as jnp
from jax import lax
from jax.experimental import pallas as pl
from jax.experimental.pallas import tpu as pltpu


def _round_up(x, m):
    return ((x + m - 1) // m) * m


# ---------------------------------------------------------------------------
# Pallas kernels
# ---------------------------------------------------------------------------
def _rating_kernel(u_ref, it_ref, o_ref):
    # u_ref:  [tm, D] bf16 gathered user embeddings (tile of batch)
    # it_ref: [D, tn] bf16 item embedding columns (tile of transposed table)
    # o_ref:  [tm, tn] bf16 sigmoid(user . item)
    logits = jnp.dot(u_ref[...], it_ref[...], preferred_element_type=jnp.float32)
    o_ref[...] = jax.nn.sigmoid(logits).astype(o_ref.dtype)   # f32 math, bf16 store


def _score_kernel(ut_ref, it_ref, o_ref):
    # ut_ref, it_ref: [D, B_pad] bf16 (batch on the lane axis -> lane-dense output)
    # o_ref:          [1, B_pad] f32
    prod = ut_ref[...].astype(jnp.float32) * it_ref[...].astype(jnp.float32)
    o_ref[...] = jnp.sum(prod, axis=0, keepdims=True)


# ---------------------------------------------------------------------------
# Wrappers
# ---------------------------------------------------------------------------
def users_rating(user_emb_gathered, item_emb_t, *, tm=256, tn=8192):
    """getUsersRating(users): sigmoid(U @ I^T).

    user_emb_gathered: [B, D] bf16
    item_emb_t:        [D, N] bf16 (stored transposed once at init)
    returns:           [B, N] bf16
    """
    B, D = user_emb_gathered.shape
    Di, N = item_emb_t.shape
    assert D == Di

    # bf16 packs two rows per sublane -> batch tile must be a multiple of 16;
    # keep the item tile a multiple of 128 so output stores stay lane-dense.
    tm = _round_up(min(tm, _round_up(B, 16)), 16)
    tn = _round_up(min(tn, _round_up(N, 128)), 128)

    # Item tile on the slow (outer) axis: it stays resident across all inner
    # batch steps, so the table is streamed exactly once per call.
    grid = (pl.cdiv(N, tn), pl.cdiv(B, tm))

    return pl.pallas_call(
        _rating_kernel,
        out_shape=jax.ShapeDtypeStruct((B, N), jnp.bfloat16),
        grid=grid,
        in_specs=[
            pl.BlockSpec((tm, D), lambda nj, bi: (bi, 0)),
            pl.BlockSpec((D, tn), lambda nj, bi: (0, nj)),
        ],
        out_specs=pl.BlockSpec((tm, tn), lambda nj, bi: (bi, nj)),
        compiler_params=pltpu.CompilerParams(
            dimension_semantics=("parallel", "parallel"),
            vmem_limit_bytes=32 << 20,   # tiles fit comfortably on v5e/v6e/v7x
        ),
    )(user_emb_gathered, item_emb_t)


def pairwise_scores(user_emb_t, item_emb_t_gathered):
    """forward(users, items): per-pair inner product.

    user_emb_t, item_emb_t_gathered: [D, B] bf16 (batch on the lane axis)
    returns: [B] f32
    """
    D, B = user_emb_t.shape
    B_pad = _round_up(B, 128)                      # lane-dense single-step output
    if B_pad != B:                                 # tiny (D x B_pad) pad only
        user_emb_t = jnp.pad(user_emb_t, ((0, 0), (0, B_pad - B)))
        item_emb_t_gathered = jnp.pad(item_emb_t_gathered, ((0, 0), (0, B_pad - B)))

    out = pl.pallas_call(
        _score_kernel,
        out_shape=jax.ShapeDtypeStruct((1, B_pad), jnp.float32),
        grid=(1,),
        in_specs=[
            pl.BlockSpec((D, B_pad), lambda i: (0, 0)),
            pl.BlockSpec((D, B_pad), lambda i: (0, 0)),
        ],
        out_specs=pl.BlockSpec((1, B_pad), lambda i: (0, 0)),
        compiler_params=pltpu.CompilerParams(vmem_limit_bytes=32 << 20),
    )(user_emb_t, item_emb_t_gathered)
    return out[0, :B]


class BasicModelPallas:
    """Concrete Pallas realization of LightGCN's BasicModel interface."""

    def __init__(self, num_users, num_items, latent_dim, key):
        ku, ki = jax.random.split(key)
        # deterministic init (normal * 0.1, as in LightGCN); bf16 storage halves
        # HBM traffic on the bandwidth-bound rating path.
        self.user_emb = (0.1 * jax.random.normal(
            ku, (num_users, latent_dim), jnp.float32)).astype(jnp.bfloat16)
        # Item table stored transposed [D, N] once at init: MXU-native [K, N] RHS,
        # lane-dense along items, no per-call pad/transpose.
        item_emb = (0.1 * jax.random.normal(
            ki, (num_items, latent_dim), jnp.float32)).astype(jnp.bfloat16)
        self.item_emb_t = jnp.transpose(item_emb)          # [D, N]

    def getUsersRating(self, users, *, tm=256, tn=8192):
        u = self.user_emb[users]                            # glue: tiny gather in plain JAX
        return users_rating(u, self.item_emb_t, tm=tm, tn=tn)

    def forward(self, users, items):
        u_t = jnp.transpose(self.user_emb[users])           # [D, B] glue (tiny)
        i_t = self.item_emb_t[:, items]                     # [D, B] column gather (tiny)
        return pairwise_scores(u_t, i_t)


# ---------------------------------------------------------------------------
# Demo / smoke test
# ---------------------------------------------------------------------------
if __name__ == "__main__":
    key = jax.random.PRNGKey(0)
    num_users, num_items, latent_dim = 64, 300, 32
    batch = 10

    model = BasicModelPallas(num_users, num_items, latent_dim, key)

    k_u, k_i = jax.random.split(jax.random.PRNGKey(1))
    users = jax.random.randint(k_u, (batch,), 0, num_users)
    items = jax.random.randint(k_i, (batch,), 0, num_items)

    # Small tiles to exercise a multi-tile grid + ragged last blocks on toy shapes
    # (tm is a multiple of 16 for bf16, tn a multiple of 128).
    scores = model.forward(users, items)                        # [batch] f32
    ratings = model.getUsersRating(users, tm=16, tn=128)        # [batch, num_items] bf16

    jax.block_until_ready(scores)
    jax.block_until_ready(ratings)

    # reference check against plain JAX (f32 math on the bf16 embeddings)
    u_f32 = model.user_emb[users].astype(jnp.float32)
    i_f32 = jnp.transpose(model.item_emb_t[:, items]).astype(jnp.float32)
    ref_scores = jnp.sum(u_f32 * i_f32, axis=1)
    ref_logits = jnp.dot(u_f32, model.item_emb_t.astype(jnp.float32))
    ref_ratings = jax.nn.sigmoid(ref_logits)

    assert scores.shape == (batch,)
    assert ratings.shape == (batch, num_items)
    assert ratings.dtype == jnp.bfloat16
    assert jnp.allclose(scores, ref_scores, atol=1e-4)
    assert jnp.allclose(ratings.astype(jnp.float32), ref_ratings, atol=1e-2)

    print("KERNEL_OK")
</pallas_src>

<mosaic_0001>
module attributes {stable_mosaic.version = 11 : i64} {
  func.func @_score_kernel(%arg0: i32, %arg1: memref<32x128xbf16, #tpu.memory_space<vmem>>, %arg2: memref<32x128xbf16, #tpu.memory_space<vmem>>, %arg3: memref<1x128xf32, #tpu.memory_space<vmem>>) attributes {dimension_semantics = [#tpu.dimension_semantics<arbitrary>], iteration_bounds = array<i64: 1>, scalar_prefetch = 0 : i64, scratch_operands = 0 : i64, tpu.core_type = #tpu.core_type<tc>, window_params = [{pipeline_mode = #tpu.pipeline_mode<synchronous>, transform_indices = @transform_0, window_bounds = array<i64: 32, 128>}, {pipeline_mode = #tpu.pipeline_mode<synchronous>, transform_indices = @transform_1, window_bounds = array<i64: 32, 128>}, {pipeline_mode = #tpu.pipeline_mode<synchronous>, transform_indices = @transform_2, window_bounds = array<i64: 1, 128>}]} {
    %c0 = arith.constant 0 : index
    %c0_0 = arith.constant 0 : index
    %0 = vector.load %arg1[%c0, %c0_0] : memref<32x128xbf16, #tpu.memory_space<vmem>>, vector<32x128xbf16>
    %1 = arith.extf %0 : vector<32x128xbf16> to vector<32x128xf32>
    %c0_1 = arith.constant 0 : index
    %c0_2 = arith.constant 0 : index
    %2 = vector.load %arg2[%c0_1, %c0_2] : memref<32x128xbf16, #tpu.memory_space<vmem>>, vector<32x128xbf16>
    %3 = arith.extf %2 : vector<32x128xbf16> to vector<32x128xf32>
    %4 = arith.mulf %1, %3 : vector<32x128xf32>
    %cst = arith.constant dense<0.000000e+00> : vector<128xf32>
    %5 = vector.multi_reduction <add>, %4, %cst [0] : vector<32x128xf32> to vector<128xf32>
    %6 = vector.shape_cast %5 : vector<128xf32> to vector<1x128xf32>
    %c0_3 = arith.constant 0 : index
    %c0_4 = arith.constant 0 : index
    %7 = vector.load %arg3[%c0_3, %c0_4] : memref<1x128xf32, #tpu.memory_space<vmem>>, vector<1x128xf32>
    tpu.vector_store %arg3[%c0_3, %c0_4], %6 {strides = array<i32>} : memref<1x128xf32, #tpu.memory_space<vmem>>, vector<1x128xf32>,
    return
  }
  func.func @transform_0(%arg0: i32) -> (i32, i32) {
    %c0_i32 = arith.constant 0 : i32
    %c0_i32_0 = arith.constant 0 : i32
    %c0_i32_1 = arith.constant 0 : i32
    return %c0_i32, %c0_i32_0 : i32, i32
  }
  func.func @transform_1(%arg0: i32) -> (i32, i32) {
    %c0_i32 = arith.constant 0 : i32
    %c0_i32_0 = arith.constant 0 : i32
    %c0_i32_1 = arith.constant 0 : i32
    return %c0_i32, %c0_i32_0 : i32, i32
  }
  func.func @transform_2(%arg0: i32) -> (i32, i32) {
    %c0_i32 = arith.constant 0 : i32
    %c0_i32_0 = arith.constant 0 : i32
    %c0_i32_1 = arith.constant 0 : i32
    return %c0_i32, %c0_i32_0 : i32, i32
  }
}

</mosaic_0001>

<bundles_post_ra>
// kernel: tpu_custom_call.1
= control target key start
LH: loop header
LB: loop body
LE: loop exit
PB: predicated region body
PF: predicated region fallthrough
CT: control target
= control target key end

     0   :  { %7 = vsyncpa [#allocation3], 0  ;;  %s237_s0 = inlined_call_operand.hbm [shape: bf16[32,128], index: 0, kind: input, shape index: {}]   ;;  %s238_s1 = inlined_call_operand.hbm [shape: bf16[32,128], index: 1, kind: input, shape index: {}]   ;;  %s239_s2 = inlined_call_operand.hbm [shape: f32[1,128], index: 2, kind: output, shape index: {}]  }
   0x1   :  { %8 = vsyncpa [#allocation6], 0 }
   0x2   :  { %9 = vsyncpa [#allocation4], 0  ;;  %s181_s9 = smov [#allocation2]   ;;  %s109_s13 = scalar_lea.hbm %s237_s0, 256 }
   0x3   :  { %s15_s10 = sshll.u32 %s181_s9, 4  ;;  %p110_p0 = scmp.ne.s32.totalorder %s237_s0, %s109_s13  ;;  %s16_s10 = int_to_ptr.vmem [resolvable:$true] %s15_s10 }
   0x4   :  { %p113_p1 = scmp.lt.u32.totalorder %s109_s13, %s237_s0 }
   0x6   :  { %p115_p2 = pnand %p113_p1, %p110_p0 }
   0x8   :  { %118 = shalt.err (!%p115_p2)
}
   0x9   :  { %s119_s18 = scalar_lea.vmem %s16_s10, 256  ;;  %p124_p4 = scmp.lt.s32.totalorder %s16_s10, %s16_s10 }
   0xa   :  { %p120_p3 = scmp.ne.s32.totalorder %s16_s10, %s119_s18  ;;  %p125_p5 = scmp.lt.s32.totalorder %s119_s18, %s119_s18 }
   0xc   :  { %p126_p6 = por %p125_p5, %p124_p4 }
   0xe   :  { %p127_p7 = pnand %p126_p6, %p120_p3 }
  0x10   :  { %130 = shalt.err (!%p127_p7)
}
  0x11   :  { %s182_s19 = smov 64   ;;  %s183_s20 = smov 4  }
  0x12   :  { %21 = dma.hbm_to_vmem [thread:$0]  %s237_s0, 256, %s16_s10, [#allocation3], %s182_s19, %s182_s19, %s183_s20  }
  0x13   :  { %s184_s23 = smov [#allocation5]   ;;  %s131_s27 = scalar_lea.hbm %s238_s1, 256 }
  0x14   :  { %s27_s24 = sshll.u32 %s184_s23, 4  ;;  %p132_p8 = scmp.ne.s32.totalorder %s238_s1, %s131_s27  ;;  %s28_s24 = int_to_ptr.vmem [resolvable:$true] %s27_s24 }
  0x15   :  { %p135_p9 = scmp.lt.u32.totalorder %s131_s27, %s238_s1 }
  0x17   :  { %p137_p10 = pnand %p135_p9, %p132_p8 }
  0x19   :  { %140 = shalt.err (!%p137_p10)
}
  0x1a   :  { %s141_s4 = scalar_lea.vmem %s28_s24, 256  ;;  %p146_p12 = scmp.lt.s32.totalorder %s28_s24, %s28_s24 }
  0x1b   :  { %p142_p11 = scmp.ne.s32.totalorder %s28_s24, %s141_s4  ;;  %p147_p13 = scmp.lt.s32.totalorder %s141_s4, %s141_s4 }
  0x1d   :  { %p148_p0 = por %p147_p13, %p146_p12 }
  0x1f   :  { %p149_p1 = pnand %p148_p0, %p142_p11 }
  0x21   :  { %152 = shalt.err (!%p149_p1)
}
  0x22   :  { %33 = dma.hbm_to_vmem [thread:$0]  %s238_s1, 256, %s28_s24, [#allocation6], %s182_s19, %s182_s19, %s183_s20  }
  0x23   :  { %175 = dma.done.wait [#allocation3], 256  }
  0x24   :  { %176 = vsyncadd [#allocation3], 4294967040 }
  0x25   :  { %177 = dma.done.wait [#allocation6], 256  }
  0x26   :  { %178 = vsyncadd [#allocation6], 4294967040  ;;  %v87_v0 = vld [vmem:[#allocation2] sm:$0xff]   ;;  %v102_v1 = vld [vmem:[#allocation2 + $0x8] sm:$0xff]   ;;  %s185_s1 = smov [#allocation7]  }
  0x27   :  { %v95_v2 = vld [vmem:[#allocation5] sm:$0xff]   ;;  %v88_v3 = vunpack.c.l.bf16 %v87_v0  ;;  %v89_v4 = vunpack.c.h.bf16 %v87_v0  ;;  %v92_v5 = vunpack.c.l.bf16 %v102_v1  ;;  %v93_v6 = vunpack.c.h.bf16 %v102_v1  ;;  %v103_v7 = vld [vmem:[#allocation5 + $0x8] sm:$0xff]   ;;  %s76_s6 = sshll.u32 %s185_s1, 4  ;;  %s77_s6 = int_to_ptr.vmem [resolvable:$true] %s76_s6 }
  0x28   :  { %v96_v8 = vunpack.c.l.bf16 %v95_v2  ;;  %v97_v9 = vunpack.c.h.bf16 %v95_v2  ;;  %v100_v10 = vunpack.c.l.bf16 %v103_v7  ;;  %v101_v11 = vunpack.c.h.bf16 %v103_v7  ;;  %s153_s7 = scalar_lea.vmem %s77_s6, 16  ;;  %s157_s8 = scalar_lea.vmem %s77_s6, 32 }
  0x29   :  { %p154_p2 = scmp.ne.s32.totalorder %s77_s6, %s153_s7  ;;  %p158_p3 = scmp.lt.s32.totalorder %s77_s6, %s77_s6 }
  0x2a   :  { %v56_v12 = vmul.f32 %v96_v8, %v88_v3  ;;  %v57_v13 = vmul.f32 %v97_v9, %v89_v4  ;;  %v58_v14 = vmul.f32 %v100_v10, %v92_v5  ;;  %v59_v15 = vmul.f32 %v101_v11, %v93_v6  ;;  %p159_p4 = scmp.lt.s32.totalorder %s157_s8, %s153_s7 }
  0x2c   :  { %v60_v16 = vadd.f32 %v57_v13, %v56_v12  ;;  %p160_p5 = por %p159_p4, %p158_p3 }
  0x2e   :  { %v61_v17 = vadd.f32 %v60_v16, %v58_v14  ;;  %p161_p6 = pnand %p160_p5, %p154_p2 }
  0x30   :  { %v62_v18 = vadd.f32 %v61_v17, %v59_v15 }
  0x32   :  { %v63_v19 = vrot.slane %v62_v18, 4 }
  0x34   :  { %v64_v20 = vadd.f32 %v63_v19, %v62_v18 }
  0x36   :  { %v65_v21 = vrot.slane %v64_v20, 2 }
  0x38   :  { %v66_v22 = vadd.f32 %v65_v21, %v64_v20 }
  0x3a   :  { %v67_v23 = vrot.slane %v66_v22, 1 }
  0x3c   :  { %v68_v24 = vadd.f32 %v67_v23, %v66_v22 }
  0x3e   :  { %69 = vst [vmem:[#allocation7] sm:$0x1] %v68_v24 }
  0x3f   :  { %164 = shalt.err (!%p161_p6)
}
  0x40   :  { %s165_s11 = scalar_lea.hbm %s239_s2, 16 }
  0x41   :  { %p166_p7 = scmp.ne.s32.totalorder %s239_s2, %s165_s11  ;;  %p169_p8 = scmp.lt.u32.totalorder %s165_s11, %s239_s2 }
  0x43   :  { %p171_p9 = pnand %p169_p8, %p166_p7 }
  0x45   :  { %174 = shalt.err (!%p171_p9)
}
  0x46   :  { %79 = dma.vmem_to_hbm [thread:$0]  %s77_s6, 16, %s239_s2, [#allocation4]  }
  0x47   :  { %179 = dma.done.wait [#allocation4], 16  }
  0x48   :  { %180 = vsyncadd [#allocation4], 4294967280 }
  0x49   :  { %83 = vsyncpa [#allocation3], 1 }
  0x4a   :  { %84 = vsyncpa [#allocation6], 1 }
  0x4b   :  { %85 = vsyncpa [#allocation4], 1 }

</bundles_post_ra>
